<compile_context>
chip_gen: v7x
topology: tpu7x:2x2x1
jax: 0.10.0
libtpu: 0.0.40
codegen_flags: <defaults>
</compile_context>

<pallas_src>
import jax
import jax.numpy as jnp
from jax.experimental import pallas as pl
from jax.experimental.pallas import tpu as pltpu


def _make_kernel(hw_total, thw, block_b, needs_mask):
    """Builds the fused kernel, specialized on static tiling parameters."""

    def kernel(x1_ref, x2_ref, w1_ref, w2_ref, fc1_ref, fc2_ref, out_ref,
               sum1, max1, sum2, max2):
        # x1_ref/x2_ref : (B, C, THW)  VMEM   (B images, spatial tile on lanes)
        # w1_ref/w2_ref : (B, 1, THW)  VMEM   (pixel-wise maps, bcast over C)
        # fc1_ref       : (HID, 2C)    VMEM
        # fc2_ref       : (C, HID)     VMEM
        # out_ref       : (B, 1, C)    VMEM   (lane-dense per-image row)
        # sum*/max*     : (B, C, 1)    VMEM scratch, f32 running accumulators
        t = pl.program_id(1)

        @pl.when(t == 0)
        def _init():
            sum1[...] = jnp.zeros(sum1.shape, jnp.float32)
            sum2[...] = jnp.zeros(sum2.shape, jnp.float32)
            max1[...] = jnp.full(max1.shape, -jnp.inf, jnp.float32)
            max2[...] = jnp.full(max2.shape, -jnp.inf, jnp.float32)

        c = x1_ref.shape[1]
        if needs_mask:
            lane = jax.lax.broadcasted_iota(jnp.int32, (c, thw), 1)
            valid = (t * thw + lane) < hw_total
        else:
            valid = None

        def accum(x_ref, w_ref, s_ref, m_ref, b):
            # Multiply in native dtype (bf16 stays bf16); accumulate sum in f32.
            p = x_ref[b] * w_ref[b]                                  # (C, THW)
            if valid is not None:
                ps = jnp.where(valid, p, 0).astype(jnp.float32)
                pm = jnp.where(valid, p.astype(jnp.float32), -jnp.inf)
            else:
                ps = p.astype(jnp.float32)
                pm = ps
            s_ref[b] += jnp.sum(ps, axis=-1, keepdims=True)          # (C, 1)
            m_ref[b] = jnp.maximum(m_ref[b],
                                   jnp.max(pm, axis=-1, keepdims=True))

        for b in range(block_b):                                      # static unroll
            accum(x1_ref, w1_ref, sum1, max1, b)
            accum(x2_ref, w2_ref, sum2, max2, b)

        @pl.when(t == pl.num_programs(1) - 1)
        def _finalize():
            inv_hw = jnp.float32(1.0 / hw_total)
            cc = fc2_ref.shape[0]
            rid = jax.lax.broadcasted_iota(jnp.int32, (cc, cc), 0)
            cid = jax.lax.broadcasted_iota(jnp.int32, (cc, cc), 1)
            eye = rid == cid
            fc1 = fc1_ref[...]
            fc2 = fc2_ref[...]
            for b in range(block_b):
                # torch.cat([pool(x1), pool(x2)], dim=1) as column vectors.
                v_avg = jnp.concatenate([sum1[b], sum2[b]], axis=0) * inv_hw
                v_max = jnp.concatenate([max1[b], max2[b]], axis=0)   # (2C, 1)
                rhs = jnp.concatenate([v_avg, v_max], axis=1)         # (2C, 2)
                # Shared MLP, avg+max paths fused in one matmul pair.
                h = jnp.maximum(
                    jnp.dot(fc1, rhs, preferred_element_type=jnp.float32), 0.0)
                o = jnp.dot(fc2, h, preferred_element_type=jnp.float32)  # (C, 2)
                o_col = o[:, 0:1] + o[:, 1:2]                            # (C, 1)
                # Sublane column -> lane-dense row (masked bcast + sublane sum).
                row = jnp.sum(jnp.where(eye, o_col, 0.0),
                              axis=0, keepdims=True)                     # (1, C)
                out_ref[b] = jax.nn.sigmoid(row).astype(out_ref.dtype)

    return kernel


def pixelwise_cross_modal_channel_attention(x1, x2, weight1, weight2,
                                            fc1_w, fc2_w,
                                            *, block_n=None, block_hw=None):
    """x1, x2: (N, C, H, W); weight1/weight2: (N, 1, H, W) pixel-wise maps;
    fc1_w: (C//ratio, 2C, 1, 1); fc2_w: (C, C//ratio, 1, 1) (PyTorch layout).
    Returns the (N, C, 1, 1) sigmoid channel-attention map (dtype = x1.dtype).
    """
    N, C, H, W = x1.shape
    HW = H * W
    hid = fc1_w.shape[0]
    itemsize = jnp.dtype(x1.dtype).itemsize

    # ---- per-step image batch B (amortize per-step overhead on small maps) --
    if block_n is not None:
        B = max(1, min(int(block_n), N))
    else:
        per_img_x_bytes = 2 * C * HW * itemsize             # x1 + x2, one image
        b_cap = max(1, N // 2) if N > 1 else 1              # keep >=2 parallel steps (v7x)
        b_fit = max(1, (2 * 1024 * 1024) // max(per_img_x_bytes, 1))
        B = int(min(8, b_cap, b_fit, N))

    # ---- spatial tile THW: x1+x2, double-buffered, must fit a VMEM budget ---
    budget = 8 * 1024 * 1024
    if block_hw is not None:
        THW = min(int(block_hw), HW)
        if THW < HW:
            THW = max(128, (THW // 128) * 128)              # lane-dim tiling rule
    elif 4 * B * C * HW * itemsize <= budget or HW <= 128:
        THW = HW                                            # whole plane per step
    else:
        B = 1
        max_thw = max(128, budget // (4 * C * itemsize))
        THW = max(128, min((max_thw // 128) * 128, (HW // 128) * 128))
        t_try = THW                                         # prefer a divisor of HW
        while t_try > 128 and HW % t_try != 0:
            t_try -= 128
        if HW % t_try == 0:
            THW = t_try

    num_t = -(-HW // THW)
    needs_mask = (HW % THW) != 0
    grid = (-(-N // B), num_t)

    # Free contiguous views only — no HBM transposes / upcasts of big inputs.
    x1_r = x1.reshape(N, C, HW)
    x2_r = x2.reshape(N, C, HW)
    w1_r = weight1.reshape(N, 1, HW)
    w2_r = weight2.reshape(N, 1, HW)
    fc1_r = fc1_w.reshape(hid, 2 * C).astype(jnp.float32)
    fc2_r = fc2_w.reshape(C, hid).astype(jnp.float32)

    kernel = _make_kernel(HW, THW, B, needs_mask)

    x_spec = pl.BlockSpec((B, C, THW), lambda i, t: (i, 0, t))
    w_spec = pl.BlockSpec((B, 1, THW), lambda i, t: (i, 0, t))
    fc1_spec = pl.BlockSpec((hid, 2 * C), lambda i, t: (0, 0))
    fc2_spec = pl.BlockSpec((C, hid), lambda i, t: (0, 0))
    out_spec = pl.BlockSpec((B, 1, C), lambda i, t: (i, 0, 0))

    bytes_accessed = ((2 * C + 2) * N * HW + N * C) * itemsize + 3 * C * hid * 4
    cost = pl.CostEstimate(flops=6 * N * C * HW + 8 * N * C * hid,
                           transcendentals=N * C,
                           bytes_accessed=int(bytes_accessed))

    out = pl.pallas_call(
        kernel,
        out_shape=jax.ShapeDtypeStruct((N, 1, C), x1.dtype),
        grid=grid,
        in_specs=[x_spec, x_spec, w_spec, w_spec, fc1_spec, fc2_spec],
        out_specs=out_spec,
        scratch_shapes=[pltpu.VMEM((B, C, 1), jnp.float32)] * 4,
        compiler_params=pltpu.CompilerParams(
            dimension_semantics=("parallel", "arbitrary"),
            vmem_limit_bytes=32 * 1024 * 1024),
        cost_estimate=cost,
    )(x1_r, x2_r, w1_r, w2_r, fc1_r, fc2_r)

    return out.reshape(N, C, 1, 1)


def _reference(x1, x2, w1, w2, fc1_w, fc2_w):
    # Plain-JAX mirror of the PyTorch module.
    def pools(x, w):
        p = (x * w).astype(jnp.float32)
        return p.mean(axis=(2, 3)), p.max(axis=(2, 3))      # (N, C) each

    a1, m1 = pools(x1, w1)
    a2, m2 = pools(x2, w2)
    avg = jnp.concatenate([a1, a2], axis=1)                  # (N, 2C)
    mx = jnp.concatenate([m1, m2], axis=1)                   # (N, 2C)
    W1 = fc1_w.reshape(fc1_w.shape[0], -1).astype(jnp.float32)  # (HID, 2C)
    W2 = fc2_w.reshape(fc2_w.shape[0], -1).astype(jnp.float32)  # (C, HID)
    mlp = lambda v: jax.nn.relu(v @ W1.T) @ W2.T
    out = jax.nn.sigmoid(mlp(avg) + mlp(mx))                 # (N, C)
    return out.reshape(out.shape[0], out.shape[1], 1, 1).astype(x1.dtype)


if __name__ == "__main__":
    key = jax.random.PRNGKey(0)
    ks = jax.random.split(key, 6)

    # in_planes must be >= ratio so the bottleneck has >= 1 channel.
    N, C, ratio = 2, 32, 16
    hid = C // ratio

    def make_inputs(H, W):
        x1 = jax.random.normal(ks[0], (N, C, H, W), jnp.float32)
        x2 = jax.random.normal(ks[1], (N, C, H, W), jnp.float32)
        w1 = jax.nn.sigmoid(jax.random.normal(ks[2], (N, 1, H, W), jnp.float32))
        w2 = jax.nn.sigmoid(jax.random.normal(ks[3], (N, 1, H, W), jnp.float32))
        return x1, x2, w1, w2

    # Conv2d(2C, hid, 1, bias=False) / Conv2d(hid, C, 1, bias=False) weights.
    b1 = 1.0 / ((2 * C) ** 0.5)
    b2 = 1.0 / (hid ** 0.5)
    fc1_w = jax.random.uniform(ks[4], (hid, 2 * C, 1, 1), jnp.float32, -b1, b1)
    fc2_w = jax.random.uniform(ks[5], (C, hid, 1, 1), jnp.float32, -b2, b2)

    # Case 1: default heuristics (single HW tile, one image per grid step).
    x1, x2, w1, w2 = make_inputs(16, 16)
    out = jax.block_until_ready(
        pixelwise_cross_modal_channel_attention(x1, x2, w1, w2, fc1_w, fc2_w))
    ref = _reference(x1, x2, w1, w2, fc1_w, fc2_w)
    assert out.shape == (N, C, 1, 1)
    assert jnp.allclose(out, ref, atol=1e-5, rtol=1e-5), "case1 mismatch"

    # Case 2: forced spatial tiling (exercises running sum/max accumulators).
    out2 = jax.block_until_ready(
        pixelwise_cross_modal_channel_attention(x1, x2, w1, w2, fc1_w, fc2_w,
                                                block_hw=128))
    assert jnp.allclose(out2, ref, atol=1e-5, rtol=1e-5), "case2 mismatch"

    # Case 3: two images per grid step (exercises the batched finalize path).
    out3 = jax.block_until_ready(
        pixelwise_cross_modal_channel_attention(x1, x2, w1, w2, fc1_w, fc2_w,
                                                block_n=2))
    assert jnp.allclose(out3, ref, atol=1e-5, rtol=1e-5), "case3 mismatch"

    # Case 4: HW not a multiple of the tile (exercises tail masking).
    x1b, x2b, w1b, w2b = make_inputs(20, 20)
    out4 = jax.block_until_ready(
        pixelwise_cross_modal_channel_attention(x1b, x2b, w1b, w2b,
                                                fc1_w, fc2_w, block_hw=128))
    ref4 = _reference(x1b, x2b, w1b, w2b, fc1_w, fc2_w)
    assert jnp.allclose(out4, ref4, atol=1e-5, rtol=1e-5), "case4 mismatch"

    print("KERNEL_OK")
</pallas_src>

<mosaic_0001>
module attributes {stable_mosaic.version = 11 : i64} {
  func.func @kernel(%arg0: i32, %arg1: i32, %arg2: memref<1x32x256xf32, #tpu.memory_space<vmem>>, %arg3: memref<1x32x256xf32, #tpu.memory_space<vmem>>, %arg4: memref<1x1x256xf32, #tpu.memory_space<vmem>>, %arg5: memref<1x1x256xf32, #tpu.memory_space<vmem>>, %arg6: memref<2x64xf32, #tpu.memory_space<vmem>>, %arg7: memref<32x2xf32, #tpu.memory_space<vmem>>, %arg8: memref<1x1x32xf32, #tpu.memory_space<vmem>>, %arg9: memref<1x32x1xf32, #tpu.memory_space<vmem>>, %arg10: memref<1x32x1xf32, #tpu.memory_space<vmem>>, %arg11: memref<1x32x1xf32, #tpu.memory_space<vmem>>, %arg12: memref<1x32x1xf32, #tpu.memory_space<vmem>>) attributes {dimension_semantics = [#tpu.dimension_semantics<parallel>, #tpu.dimension_semantics<arbitrary>], iteration_bounds = array<i64: 2, 1>, scalar_prefetch = 0 : i64, scratch_operands = 4 : i64, tpu.core_type = #tpu.core_type<tc>, window_params = [{transform_indices = @transform_0, window_bounds = array<i64: 1, 32, 256>}, {transform_indices = @transform_1, window_bounds = array<i64: 1, 32, 256>}, {transform_indices = @transform_2, window_bounds = array<i64: 1, 1, 256>}, {transform_indices = @transform_3, window_bounds = array<i64: 1, 1, 256>}, {pipeline_mode = #tpu.pipeline_mode<synchronous>, transform_indices = @transform_4, window_bounds = array<i64: 2, 64>}, {pipeline_mode = #tpu.pipeline_mode<synchronous>, transform_indices = @transform_5, window_bounds = array<i64: 32, 2>}, {transform_indices = @transform_6, window_bounds = array<i64: 1, 1, 32>}]} {
    %c0_i32 = arith.constant 0 : i32
    %0 = arith.cmpi eq, %arg1, %c0_i32 : i32
    %1 = arith.extui %0 : i1 to i32
    %c0_i32_0 = arith.constant 0 : i32
    %2 = arith.cmpi ne, %1, %c0_i32_0 : i32
    scf.if %2 {
      %cst_41 = arith.constant 0.000000e+00 : f32
      %50 = vector.broadcast %cst_41 : f32 to vector<1x32x1xf32>
      %c0_42 = arith.constant 0 : index
      %c0_43 = arith.constant 0 : index
      %c0_44 = arith.constant 0 : index
      %51 = vector.load %arg9[%c0_42, %c0_43, %c0_44] : memref<1x32x1xf32, #tpu.memory_space<vmem>>, vector<1x32x1xf32>
      tpu.vector_store %arg9[%c0_42, %c0_43, %c0_44], %50 {strides = array<i32>} : memref<1x32x1xf32, #tpu.memory_space<vmem>>, vector<1x32x1xf32>,
      %cst_45 = arith.constant 0.000000e+00 : f32
      %52 = vector.broadcast %cst_45 : f32 to vector<1x32x1xf32>
      %c0_46 = arith.constant 0 : index
      %c0_47 = arith.constant 0 : index
      %c0_48 = arith.constant 0 : index
      %53 = vector.load %arg11[%c0_46, %c0_47, %c0_48] : memref<1x32x1xf32, #tpu.memory_space<vmem>>, vector<1x32x1xf32>
      tpu.vector_store %arg11[%c0_46, %c0_47, %c0_48], %52 {strides = array<i32>} : memref<1x32x1xf32, #tpu.memory_space<vmem>>, vector<1x32x1xf32>,
      %cst_49 = arith.constant 0xFF800000 : f32
      %54 = vector.broadcast %cst_49 : f32 to vector<1x32x1xf32>
      %c0_50 = arith.constant 0 : index
      %c0_51 = arith.constant 0 : index
      %c0_52 = arith.constant 0 : index
      %55 = vector.load %arg10[%c0_50, %c0_51, %c0_52] : memref<1x32x1xf32, #tpu.memory_space<vmem>>, vector<1x32x1xf32>
      tpu.vector_store %arg10[%c0_50, %c0_51, %c0_52], %54 {strides = array<i32>} : memref<1x32x1xf32, #tpu.memory_space<vmem>>, vector<1x32x1xf32>,
      %cst_53 = arith.constant 0xFF800000 : f32
      %56 = vector.broadcast %cst_53 : f32 to vector<1x32x1xf32>
      %c0_54 = arith.constant 0 : index
      %c0_55 = arith.constant 0 : index
      %c0_56 = arith.constant 0 : index
      %57 = vector.load %arg12[%c0_54, %c0_55, %c0_56] : memref<1x32x1xf32, #tpu.memory_space<vmem>>, vector<1x32x1xf32>
      tpu.vector_store %arg12[%c0_54, %c0_55, %c0_56], %56 {strides = array<i32>} : memref<1x32x1xf32, #tpu.memory_space<vmem>>, vector<1x32x1xf32>,
    } else {
    }
    %c0 = arith.constant 0 : index
    %c0_1 = arith.constant 0 : index
    %c0_2 = arith.constant 0 : index
    %3 = vector.load %arg2[%c0, %c0_1, %c0_2] : memref<1x32x256xf32, #tpu.memory_space<vmem>>, vector<1x32x256xf32>
    %4 = vector.shape_cast %3 : vector<1x32x256xf32> to vector<32x256xf32>
    %c0_3 = arith.constant 0 : index
    %c0_4 = arith.constant 0 : index
    %c0_5 = arith.constant 0 : index
    %5 = vector.load %arg4[%c0_3, %c0_4, %c0_5] : memref<1x1x256xf32, #tpu.memory_space<vmem>>, vector<1x1x256xf32>
    %6 = vector.shape_cast %5 : vector<1x1x256xf32> to vector<1x256xf32>
    %7 = vector.broadcast %6 : vector<1x256xf32> to vector<32x256xf32>
    %8 = arith.mulf %4, %7 : vector<32x256xf32>
    %c0_6 = arith.constant 0 : index
    %c0_7 = arith.constant 0 : index
    %c0_8 = arith.constant 0 : index
    %9 = vector.load %arg9[%c0_6, %c0_7, %c0_8] : memref<1x32x1xf32, #tpu.memory_space<vmem>>, vector<1x32x1xf32>
    %10 = vector.shape_cast %9 : vector<1x32x1xf32> to vector<32x1xf32>
    %cst = arith.constant dense<0.000000e+00> : vector<32xf32>
    %11 = vector.multi_reduction <add>, %8, %cst [1] : vector<32x256xf32> to vector<32xf32>
    %12 = vector.shape_cast %11 : vector<32xf32> to vector<32x1xf32>
    %13 = arith.addf %10, %12 : vector<32x1xf32>
    %c0_9 = arith.constant 0 : index
    %c0_10 = arith.constant 0 : index
    %c0_11 = arith.constant 0 : index
    %14 = vector.load %arg9[%c0_9, %c0_10, %c0_11] : memref<1x32x1xf32, #tpu.memory_space<vmem>>, vector<1x32x1xf32>
    %15 = vector.shape_cast %14 : vector<1x32x1xf32> to vector<32x1xf32>
    %16 = vector.shape_cast %13 : vector<32x1xf32> to vector<1x32x1xf32>
    tpu.vector_store %arg9[%c0_9, %c0_10, %c0_11], %16 {strides = array<i32>} : memref<1x32x1xf32, #tpu.memory_space<vmem>>, vector<1x32x1xf32>,
    %c0_12 = arith.constant 0 : index
    %c0_13 = arith.constant 0 : index
    %c0_14 = arith.constant 0 : index
    %17 = vector.load %arg10[%c0_12, %c0_13, %c0_14] : memref<1x32x1xf32, #tpu.memory_space<vmem>>, vector<1x32x1xf32>
    %18 = vector.shape_cast %17 : vector<1x32x1xf32> to vector<32x1xf32>
    %cst_15 = arith.constant dense<0xFF800000> : vector<32xf32>
    %19 = vector.multi_reduction <maximumf>, %8, %cst_15 [1] : vector<32x256xf32> to vector<32xf32>
    %20 = vector.shape_cast %19 : vector<32xf32> to vector<32x1xf32>
    %21 = arith.maximumf %18, %20 : vector<32x1xf32>
    %c0_16 = arith.constant 0 : index
    %c0_17 = arith.constant 0 : index
    %c0_18 = arith.constant 0 : index
    %22 = vector.load %arg10[%c0_16, %c0_17, %c0_18] : memref<1x32x1xf32, #tpu.memory_space<vmem>>, vector<1x32x1xf32>
    %23 = vector.shape_cast %22 : vector<1x32x1xf32> to vector<32x1xf32>
    %24 = vector.shape_cast %21 : vector<32x1xf32> to vector<1x32x1xf32>
    tpu.vector_store %arg10[%c0_16, %c0_17, %c0_18], %24 {strides = array<i32>} : memref<1x32x1xf32, #tpu.memory_space<vmem>>, vector<1x32x1xf32>,
    %c0_19 = arith.constant 0 : index
    %c0_20 = arith.constant 0 : index
    %c0_21 = arith.constant 0 : index
    %25 = vector.load %arg3[%c0_19, %c0_20, %c0_21] : memref<1x32x256xf32, #tpu.memory_space<vmem>>, vector<1x32x256xf32>
    %26 = vector.shape_cast %25 : vector<1x32x256xf32> to vector<32x256xf32>
    %c0_22 = arith.constant 0 : index
    %c0_23 = arith.constant 0 : index
    %c0_24 = arith.constant 0 : index
    %27 = vector.load %arg5[%c0_22, %c0_23, %c0_24] : memref<1x1x256xf32, #tpu.memory_space<vmem>>, vector<1x1x256xf32>
    %28 = vector.shape_cast %27 : vector<1x1x256xf32> to vector<1x256xf32>
    %29 = vector.broadcast %28 : vector<1x256xf32> to vector<32x256xf32>
    %30 = arith.mulf %26, %29 : vector<32x256xf32>
    %c0_25 = arith.constant 0 : index
    %c0_26 = arith.constant 0 : index
    %c0_27 = arith.constant 0 : index
    %31 = vector.load %arg11[%c0_25, %c0_26, %c0_27] : memref<1x32x1xf32, #tpu.memory_space<vmem>>, vector<1x32x1xf32>
    %32 = vector.shape_cast %31 : vector<1x32x1xf32> to vector<32x1xf32>
    %cst_28 = arith.constant dense<0.000000e+00> : vector<32xf32>
    %33 = vector.multi_reduction <add>, %30, %cst_28 [1] : vector<32x256xf32> to vector<32xf32>
    %34 = vector.shape_cast %33 : vector<32xf32> to vector<32x1xf32>
    %35 = arith.addf %32, %34 : vector<32x1xf32>
    %c0_29 = arith.constant 0 : index
    %c0_30 = arith.constant 0 : index
    %c0_31 = arith.constant 0 : index
    %36 = vector.load %arg11[%c0_29, %c0_30, %c0_31] : memref<1x32x1xf32, #tpu.memory_space<vmem>>, vector<1x32x1xf32>
    %37 = vector.shape_cast %36 : vector<1x32x1xf32> to vector<32x1xf32>
    %38 = vector.shape_cast %35 : vector<32x1xf32> to vector<1x32x1xf32>
    tpu.vector_store %arg11[%c0_29, %c0_30, %c0_31], %38 {strides = array<i32>} : memref<1x32x1xf32, #tpu.memory_space<vmem>>, vector<1x32x1xf32>,
    %c0_32 = arith.constant 0 : index
    %c0_33 = arith.constant 0 : index
    %c0_34 = arith.constant 0 : index
    %39 = vector.load %arg12[%c0_32, %c0_33, %c0_34] : memref<1x32x1xf32, #tpu.memory_space<vmem>>, vector<1x32x1xf32>
    %40 = vector.shape_cast %39 : vector<1x32x1xf32> to vector<32x1xf32>
    %cst_35 = arith.constant dense<0xFF800000> : vector<32xf32>
    %41 = vector.multi_reduction <maximumf>, %30, %cst_35 [1] : vector<32x256xf32> to vector<32xf32>
    %42 = vector.shape_cast %41 : vector<32xf32> to vector<32x1xf32>
    %43 = arith.maximumf %40, %42 : vector<32x1xf32>
    %c0_36 = arith.constant 0 : index
    %c0_37 = arith.constant 0 : index
    %c0_38 = arith.constant 0 : index
    %44 = vector.load %arg12[%c0_36, %c0_37, %c0_38] : memref<1x32x1xf32, #tpu.memory_space<vmem>>, vector<1x32x1xf32>
    %45 = vector.shape_cast %44 : vector<1x32x1xf32> to vector<32x1xf32>
    %46 = vector.shape_cast %43 : vector<32x1xf32> to vector<1x32x1xf32>
    tpu.vector_store %arg12[%c0_36, %c0_37, %c0_38], %46 {strides = array<i32>} : memref<1x32x1xf32, #tpu.memory_space<vmem>>, vector<1x32x1xf32>,
    %c0_i32_39 = arith.constant 0 : i32
    %47 = arith.cmpi eq, %arg1, %c0_i32_39 : i32
    %48 = arith.extui %47 : i1 to i32
    %c0_i32_40 = arith.constant 0 : i32
    %49 = arith.cmpi ne, %48, %c0_i32_40 : i32
    scf.if %49 {
      %50 = tpu.iota {dimensions = array<i32: 0>} : vector<32x32xi32>
      %51 = tpu.iota {dimensions = array<i32: 1>} : vector<32x32xi32>
      %52 = arith.cmpi eq, %50, %51 : vector<32x32xi32>
      %c0_41 = arith.constant 0 : index
      %c0_42 = arith.constant 0 : index
      %53 = vector.load %arg6[%c0_41, %c0_42] : memref<2x64xf32, #tpu.memory_space<vmem>>, vector<2x64xf32>
      %c0_43 = arith.constant 0 : index
      %c0_44 = arith.constant 0 : index
      %54 = vector.load %arg7[%c0_43, %c0_44] : memref<32x2xf32, #tpu.memory_space<vmem>>, vector<32x2xf32>
      %c0_45 = arith.constant 0 : index
      %c0_46 = arith.constant 0 : index
      %c0_47 = arith.constant 0 : index
      %55 = vector.load %arg9[%c0_45, %c0_46, %c0_47] : memref<1x32x1xf32, #tpu.memory_space<vmem>>, vector<1x32x1xf32>
      %56 = vector.shape_cast %55 : vector<1x32x1xf32> to vector<32x1xf32>
      %c0_48 = arith.constant 0 : index
      %c0_49 = arith.constant 0 : index
      %c0_50 = arith.constant 0 : index
      %57 = vector.load %arg11[%c0_48, %c0_49, %c0_50] : memref<1x32x1xf32, #tpu.memory_space<vmem>>, vector<1x32x1xf32>
      %58 = vector.shape_cast %57 : vector<1x32x1xf32> to vector<32x1xf32>
      %59 = tpu.concatenate %56, %58 in 0 : vector<32x1xf32>, vector<32x1xf32> -> vector<64x1xf32>
      %cst_51 = arith.constant 3.906250e-03 : f32
      %60 = vector.broadcast %cst_51 : f32 to vector<64x1xf32>
      %61 = arith.mulf %59, %60 : vector<64x1xf32>
      %c0_52 = arith.constant 0 : index
      %c0_53 = arith.constant 0 : index
      %c0_54 = arith.constant 0 : index
      %62 = vector.load %arg10[%c0_52, %c0_53, %c0_54] : memref<1x32x1xf32, #tpu.memory_space<vmem>>, vector<1x32x1xf32>
      %63 = vector.shape_cast %62 : vector<1x32x1xf32> to vector<32x1xf32>
      %c0_55 = arith.constant 0 : index
      %c0_56 = arith.constant 0 : index
      %c0_57 = arith.constant 0 : index
      %64 = vector.load %arg12[%c0_55, %c0_56, %c0_57] : memref<1x32x1xf32, #tpu.memory_space<vmem>>, vector<1x32x1xf32>
      %65 = vector.shape_cast %64 : vector<1x32x1xf32> to vector<32x1xf32>
      %66 = tpu.concatenate %63, %65 in 0 : vector<32x1xf32>, vector<32x1xf32> -> vector<64x1xf32>
      %67 = tpu.concatenate %61, %66 in 1 : vector<64x1xf32>, vector<64x1xf32> -> vector<64x2xf32>
      %cst_58 = arith.constant dense<0.000000e+00> : vector<2x2xf32>
      %68 = tpu.matmul %53, %67, %cst_58 {dimension_numbers = #tpu.dot_dimension_numbers<[1], [0], [0], [1], [0, 0, 1, 1], [], []>} : vector<2x64xf32>, vector<64x2xf32>, vector<2x2xf32> -> vector<2x2xf32>
      %cst_59 = arith.constant 0.000000e+00 : f32
      %69 = vector.broadcast %cst_59 : f32 to vector<2x2xf32>
      %70 = arith.maximumf %68, %69 : vector<2x2xf32>
      %cst_60 = arith.constant dense<0.000000e+00> : vector<32x2xf32>
      %71 = tpu.matmul %54, %70, %cst_60 {dimension_numbers = #tpu.dot_dimension_numbers<[1], [0], [0], [1], [0, 0, 1, 1], [], []>} : vector<32x2xf32>, vector<2x2xf32>, vector<32x2xf32> -> vector<32x2xf32>
      %72 = vector.extract_strided_slice %71 {offsets = [0, 0], sizes = [32, 1], strides = [1, 1]} : vector<32x2xf32> to vector<32x1xf32>
      %73 = vector.extract_strided_slice %71 {offsets = [0, 1], sizes = [32, 1], strides = [1, 1]} : vector<32x2xf32> to vector<32x1xf32>
      %74 = arith.addf %72, %73 : vector<32x1xf32>
      %cst_61 = arith.constant 0.000000e+00 : f32
      %75 = vector.shape_cast %74 : vector<32x1xf32> to vector<32x1xf32>
      %76 = vector.broadcast %75 : vector<32x1xf32> to vector<32x32xf32>
      %77 = vector.broadcast %cst_61 : f32 to vector<32x32xf32>
      %78 = arith.select %52, %76, %77 : vector<32x32xi1>, vector<32x32xf32>
      %cst_62 = arith.constant dense<0.000000e+00> : vector<32xf32>
      %79 = vector.multi_reduction <add>, %78, %cst_62 [0] : vector<32x32xf32> to vector<32xf32>
      %80 = vector.shape_cast %79 : vector<32xf32> to vector<1x32xf32>
      %81 = arith.negf %80 : vector<1x32xf32>
      %82 = math.exp %81 : vector<1x32xf32>
      %cst_63 = arith.constant 1.000000e+00 : f32
      %83 = vector.broadcast %cst_63 : f32 to vector<1x32xf32>
      %84 = arith.addf %83, %82 : vector<1x32xf32>
      %85 = arith.divf %83, %84 : vector<1x32xf32>
      %c0_64 = arith.constant 0 : index
      %c0_65 = arith.constant 0 : index
      %c0_66 = arith.constant 0 : index
      %86 = vector.load %arg8[%c0_64, %c0_65, %c0_66] : memref<1x1x32xf32, #tpu.memory_space<vmem>>, vector<1x1x32xf32>
      %87 = vector.shape_cast %86 : vector<1x1x32xf32> to vector<1x32xf32>
      %88 = vector.shape_cast %85 : vector<1x32xf32> to vector<1x1x32xf32>
      tpu.vector_store %arg8[%c0_64, %c0_65, %c0_66], %88 {strides = array<i32>} : memref<1x1x32xf32, #tpu.memory_space<vmem>>, vector<1x1x32xf32>,
    } else {
    }
    return
  }
  func.func @transform_0(%arg0: i32, %arg1: i32) -> (i32, i32, i32) {
    %c0_i32 = arith.constant 0 : i32
    %c0_i32_0 = arith.constant 0 : i32
    return %arg0, %c0_i32, %arg1 : i32, i32, i32
  }
  func.func @transform_1(%arg0: i32, %arg1: i32) -> (i32, i32, i32) {
    %c0_i32 = arith.constant 0 : i32
    %c0_i32_0 = arith.constant 0 : i32
    return %arg0, %c0_i32, %arg1 : i32, i32, i32
  }
  func.func @transform_2(%arg0: i32, %arg1: i32) -> (i32, i32, i32) {
    %c0_i32 = arith.constant 0 : i32
    %c0_i32_0 = arith.constant 0 : i32
    return %arg0, %c0_i32, %arg1 : i32, i32, i32
  }
  func.func @transform_3(%arg0: i32, %arg1: i32) -> (i32, i32, i32) {
    %c0_i32 = arith.constant 0 : i32
    %c0_i32_0 = arith.constant 0 : i32
    return %arg0, %c0_i32, %arg1 : i32, i32, i32
  }
  func.func @transform_4(%arg0: i32, %arg1: i32) -> (i32, i32) {
    %c0_i32 = arith.constant 0 : i32
    %c0_i32_0 = arith.constant 0 : i32
    %c0_i32_1 = arith.constant 0 : i32
    return %c0_i32, %c0_i32_0 : i32, i32
  }
  func.func @transform_5(%arg0: i32, %arg1: i32) -> (i32, i32) {
    %c0_i32 = arith.constant 0 : i32
    %c0_i32_0 = arith.constant 0 : i32
    %c0_i32_1 = arith.constant 0 : i32
    return %c0_i32, %c0_i32_0 : i32, i32
  }
  func.func @transform_6(%arg0: i32, %arg1: i32) -> (i32, i32, i32) {
    %c0_i32 = arith.constant 0 : i32
    %c0_i32_0 = arith.constant 0 : i32
    %c0_i32_1 = arith.constant 0 : i32
    return %arg0, %c0_i32, %c0_i32_0 : i32, i32, i32
  }
}

</mosaic_0001>

<bundles_post_ra>
// kernel: tpu_custom_call.1
= control target key start
LH: loop header
LB: loop body
LE: loop exit
PB: predicated region body
PF: predicated region fallthrough
CT: control target
= control target key end

     0   :  { %s1765_s0 = inlined_call_operand.hbm [shape: f32[2,32,256], index: 0, kind: input, shape index: {}]   ;;  %s1766_s1 = inlined_call_operand.hbm [shape: f32[2,32,256], index: 1, kind: input, shape index: {}]   ;;  %s1767_s2 = inlined_call_operand.vmem [shape: f32[2,1,256], index: 2, kind: input, shape index: {}]   ;;  %s1768_s3 = inlined_call_operand.vmem [shape: f32[2,1,256], index: 3, kind: input, shape index: {}]   ;;  %s1769_s4 = inlined_call_operand.vmem [shape: f32[2,64], index: 4, kind: input, shape index: {}]   ;;  %s1770_s5 = inlined_call_operand.vmem [shape: f32[32,2], index: 5, kind: input, shape index: {}]   ;;  %s1771_s6 = inlined_call_operand.hbm [shape: f32[2,1,32], index: 6, kind: output, shape index: {}]  }
   0x1   :  { %1777 = sst [smem:[#allocation16_spill]] %s1765_s0 }
   0x2   :  { %11 = vsyncpa [#allocation7], 0 }
   0x3   :  { %13 = vsyncpa [#allocation7 + $0x1], 0 }
   0x4   :  { %14 = vsyncpa [#allocation10], 0 }
   0x5   :  { %16 = vsyncpa [#allocation10 + $0x1], 0 }
   0x6   :  { %17 = vsyncpa [#allocation8], 0 }
   0x7   :  { %19 = vsyncpa [#allocation8 + $0x1], 0  ;;  %s1420_s21 = smov 0   ;;  %s1422_s22 = smov 0  }
   0x8   :  { %s1424_s23 = smov 0   ;;  %s1426_s24 = smov 0  }
   0x9   :  { %s1428_s25 = smov 0   ;;  %s1430_s26 = smov 0  }
   0xa LB: > { %s1043_s27 = sadd.s32 4294967295, %s1371_s26   ;;  %s1044_s28 = sadd.s32 4294967294, %s1371_s26   ;;  %s1371_s26 = sphi %s1430_s26, %s25_s26   ;;  %s1367_s25 = sphi %s1428_s25, %s1798_s25   ;;  %s1363_s24 = sphi %s1426_s24, %s1797_s24   ;;  %s1359_s23 = sphi %s1424_s23, %s1796_s23   ;;  %s1355_s22 = sphi %s1422_s22, %s1795_s22   ;;  %s1351_s21 = sphi %s1420_s21, %s1794_s21  }
   0xb   : > { %s37_s29 = sadd.s32 1, %s1367_s25  ;;  %s46_s30 = sadd.s32 1, %s1359_s23 }
   0xc   : > { %p39_p0 = scmp.ge.s32.totalorder %s37_s29, 2  ;;  %p53_p1 = scmp.ne.s32.totalorder %s1359_s23, %s1355_s22 }
   0xd   : > { %p54_p2 = scmp.eq.s32.totalorder %s1371_s26, 0  ;;  %p59_p3 = scmp.ne.s32.totalorder %s1355_s22, %s1351_s21 }
   0xe   : > { %s1800_s29 = smov (%p39_p0, %s37_s29), 0  ;;  %p60_p5 = scmp.eq.s32.totalorder %s1043_s27, 0 }
   0xf   : > { %1778 = sst [smem:[#allocation15_spill]] %s1800_s29  ;;  %p1461_p4 = por %p54_p2, %p53_p1 }
  0x10   : > { %s41_s8 = ssub.s32 %s1367_s25, %s1800_s29  ;;  %p209_p6 = scmp.eq.s32.totalorder %s1043_s27, 1 }
  0x11   : > { %p44_p7 = scmp.eq.s32.totalorder %s41_s8, 0  ;;  %p1467_p8 = por %p60_p5, %p59_p3 }
  0x12   : > { %p1471_p9 = por %p209_p6, %p53_p1  ;;  %p215_p10 = scmp.eq.s32.totalorder %s1044_s28, 1 }
  0x13   : > { %s1780_s9 = scalar_select %p1467_p8, 1, 0 }
  0x14   : > { %s1781_s10 = scalar_select %p1471_p9, 1, 0 }
  0x15   : > { %s1476_s11 = scalar_select %p44_p7, %s1359_s23, %s46_s30  }
  0x16   : > { %p1478_p11 = por %p215_p10, %p59_p3  ;;  %p1140_p13 = scmp.lt.s32.totalorder %s1371_s26, 2 }
  0x17   : > { %s1485_s13 = sand.u32 1, %s1359_s23   ;;  %s1068_s15 = sshll.u32 %s1367_s25, 10 }
  0x18   : > { %s1782_s12 = scalar_select %p1478_p11, 1, 0 }
  0x19   : > { %s1772_s14 = sshll.u32 %s1485_s13, 6  ;;  %s1783_s0 = sld [smem:[#allocation16_spill]] }
  0x1a   : > { %s245_s19 = scalar_lea.vmem [#allocation6], %s1772_s14  ;;  %p1502_p0 = pnand %p1140_p13, %p1461_p4 }
  0x1b   : > { %s254_s20 = sshll.u32 %s245_s19, 4  ;;  %s242_s28 = scalar_lea.sflag [#allocation7], %s1485_s13  ;;  %s1498_s20 = int_to_ptr.vmem [resolvable:$true] %s254_s20 }
  0x1c   : > { %p1227_p3 = pneg %p1502_p0 }
  0x1f   : > { %s1494_s18 = scalar_lea.hbm %s1783_s0, %s1068_s15  ;;  %s1230_s7 = scalar_lea.hbm %s1783_s0, 2048 }
  0x20   : > { %s1225_s30 = scalar_lea.hbm %s1494_s18, 1024  ;;  %p1231_p4 = scmp.lt.u32.totalorder %s1494_s18, %s1783_s0 }
  0x21   : > { %p1226_p2 = scmp.ne.s32.totalorder %s1494_s18, %s1225_s30  ;;  %p1232_p7 = scmp.lt.u32.totalorder %s1230_s7, %s1225_s30 }
  0x22   : > { %p1234_p13 = scmp.lt.u32.totalorder %s1225_s30, %s1494_s18 }
  0x23   : > { %p1228_p5 = pnand %p1227_p3, %p1226_p2  ;;  %p1233_p10 = por %p1232_p7, %p1231_p4 }
  0x25   : > { %p1229_p6 = pneg %p1228_p5  ;;  %p1235_p12 = por %p1234_p13, %p1233_p10 }
  0x27   : > { %p1236_p1 = pnand %p1235_p12, %p1229_p6 }
  0x29   : > { %1239 = shalt.err (!%p1236_p1)
}
  0x2a   : > { %s1240_s14 = scalar_lea.vmem %s1498_s20, 1024  ;;  %s1373_s8 = smov [#allocation6]  }
  0x2b   : > { %p1241_p2 = scmp.ne.s32.totalorder %s1498_s20, %s1240_s14  ;;  %s1245_s16 = sshll.u32 %s1373_s8, 4  ;;  %s1246_s16 = int_to_ptr.vmem [resolvable:$false] %s1245_s16 }
  0x2c   : > { %s1247_s17 = scalar_lea.vmem %s1246_s16, 2048  ;;  %p1248_p9 = scmp.lt.s32.totalorder %s1498_s20, %s1246_s16 }
  0x2d   : > { %p1243_p5 = pnand %p1241_p2, %p1227_p3  ;;  %p1249_p4 = scmp.lt.s32.totalorder %s1247_s17, %s1240_s14 }
  0x2f   : > { %p1244_p11 = pneg %p1243_p5  ;;  %p1250_p7 = por %p1249_p4, %p1248_p9 }
  0x31   : > { %p1251_p10 = pnand %p1250_p7, %p1244_p11 }
  0x33   : > { %1254 = shalt.err (!%p1251_p10)
}
  0x34   : > { %s1775_s30 = smov 256   ;;  %s1375_s7 = smov 16  }
  0x35   : > { %1132 = dma.hbm_to_vmem [thread:$0]  (!%p1502_p0), %s1494_s18, 1024, %s1498_s20, %s242_s28, %s1775_s30, %s1775_s30, %s1375_s7  }
  0x36   : > { %p309_p9 = scmp.lt.s32.totalorder %s1371_s26, 3  ;;  %s1544_s8 = scalar_lea.hbm %s1766_s1, %s1068_s15 }
  0x37   : > { %p1785_p11 = scmp.ge.s32.totalorder %s1371_s26, 1  ;;  %s1787_s17 = sshll.u32 %s1485_s13, 6 }
  0x38   : > { %s268_s0 = scalar_lea.vmem [#allocation9], %s1787_s17  ;;  %s265_s18 = scalar_lea.sflag [#allocation10], %s1485_s13 }
  0x39   : > { %p1548_p12 = pnand %p1785_p11, %p309_p9  ;;  %s277_s29 = sshll.u32 %s268_s0, 4  ;;  %s1554_s29 = int_to_ptr.vmem [resolvable:$true] %s277_s29 }
  0x3a   : > { %s1255_s20 = scalar_lea.hbm %s1544_s8, 1024  ;;  %s1260_s14 = scalar_lea.hbm %s1766_s1, 2048 }
  0x3b   : > { %p1256_p1 = scmp.ne.s32.totalorder %s1544_s8, %s1255_s20  ;;  %p1261_p2 = scmp.lt.u32.totalorder %s1544_s8, %s1766_s1 }
  0x3c   : > { %p1262_p5 = scmp.lt.u32.totalorder %s1260_s14, %s1255_s20  ;;  %p1264_p7 = scmp.lt.u32.totalorder %s1255_s20, %s1544_s8 }
  0x3d   : > { %p1258_p6 = pnand %p1256_p1, %p1227_p3 }
  0x3e   : > { %p1263_p4 = por %p1262_p5, %p1261_p2 }
  0x3f   : > { %p1259_p13 = pneg %p1258_p6 }
  0x40   : > { %p1265_p10 = por %p1264_p7, %p1263_p4 }
  0x42   : > { %p1266_p9 = pnand %p1265_p10, %p1259_p13 }
  0x44   : > { %1269 = shalt.err (!%p1266_p9)
}
  0x45   : > { %s1270_s0 = scalar_lea.vmem %s1554_s29, 1024  ;;  %s1376_s17 = smov [#allocation9]  }
  0x46   : > { %p1271_p11 = scmp.ne.s32.totalorder %s1554_s29, %s1270_s0  ;;  %s1275_s15 = sshll.u32 %s1376_s17, 4  ;;  %s1276_s15 = int_to_ptr.vmem [resolvable:$false] %s1275_s15 }
  0x47   : > { %s1277_s30 = scalar_lea.vmem %s1276_s15, 2048  ;;  %p1278_p8 = scmp.lt.s32.totalorder %s1554_s29, %s1276_s15 }
  0x48   : > { %p1273_p1 = pnand %p1271_p11, %p1227_p3  ;;  %p1279_p2 = scmp.lt.s32.totalorder %s1277_s30, %s1270_s0 }
  0x4a   : > { %p1274_p6 = pneg %p1273_p1  ;;  %p1280_p5 = por %p1279_p2, %p1278_p8 }
  0x4c   : > { %p1281_p4 = pnand %p1280_p5, %p1274_p6 }
  0x4e   : > { %1284 = shalt.err (!%p1281_p4)
}
  0x4f   : > { %s1788_s20 = smov 256   ;;  %313 = sbr.rel (%p1548_p12) target bundleno = 1131 (0x46b), region = 44 }
  0x50   : > { %1135 = dma.hbm_to_vmem [thread:$0]  (!%p1502_p0), %s1544_s8, 1024, %s1554_s29, %s265_s18, %s1788_s20, %s1788_s20, %s1375_s7  }
  0x51   : > { %s1588_s28 = sand.u32 (!%p1548_p12), 1, %s1355_s22   ;;  %p1789_p8 = scmp.ne.s32.totalorder (!%p1548_p12), %s1780_s9, 0 }
  0x52   : > { %s1054_s14 = sshll.u32 (!%p1548_p12), %s1588_s28, 6  ;;  %s316_s19 = scalar_lea.sflag (!%p1548_p12), [#allocation7], %s1588_s28 }
  0x53   : > { %s1592_s27 = scalar_lea.vmem (!%p1548_p12), [#allocation6], %s1054_s14 }
  0x56   : > { %1338 = dma.done.wait (%p1789_p8), %s316_s19, 1024  }
  0x57   : > { %1340 = vsyncadd (%p1789_p8), %s316_s19, 4294966272  ;;  %s325_s29 = scalar_lea.sflag [#allocation10], %s1588_s28  ;;  %s1599_s13 = scalar_lea.vmem [#allocation9], %s1054_s14 }
  0x58   : > { %1342 = dma.done.wait (%p1789_p8), %s325_s29, 1024  }
  0x59   : > { %1344 = vsyncadd (%p1789_p8), %s325_s29, 4294966272  ;;  %p380_p0 = scmp.lt.s32.totalorder %s1363_s24, 1  ;;  %v428_v0 = vlaneseq  ;;  %vm401_vm0 = vcmask 7168   ;;  %v1377_v1 = vmov -inf   ;;  %v422_v5 = vld [vmem:[%s1592_s27 + $0x20] sm:$0xff]  ;;  %v423_v6 = vld [vmem:[%s1592_s27 + $0x28] sm:$0xff] }
  0x5a   : > { %412 = vst.msk [vmem:[#allocation3 + $0x10] sm:$0xff] %vm401_vm0, %v1377_v1  ;;  %410 = vst.msk [vmem:[#allocation3] sm:$0xff] %vm401_vm0, %v1377_v1  ;;  %v418_v10 = vld [vmem:[%s1592_s27] sm:$0xff]  ;;  %v419_v11 = vld [vmem:[%s1592_s27 + $0x8] sm:$0xff]  ;;  %v1378_v59 = vmov 0.0   ;;  %s1380_s30 = smov 1  }
  0x5b   : > { %411 = vst.msk [vmem:[#allocation3 + $0x8] sm:$0xff] %vm401_vm0, %v1377_v1  ;;  %413 = vst.msk [vmem:[#allocation3 + $0x18] sm:$0xff] %vm401_vm0, %v1377_v1  ;;  %s381_s9 = scalar_select %p380_p0, %s1363_s24, 1  ;;  %v1616_v2 = vshrl.u32 %v428_v0, 7  ;;  %v424_v12 = vld [vmem:[%s1592_s27 + $0x30] sm:$0xff]  ;;  %v425_v13 = vld [vmem:[%s1592_s27 + $0x38] sm:$0xff] }
  0x5c   : > { %414 = vst.msk [vmem:[#allocation5] sm:$0xff] %vm401_vm0, %v1377_v1  ;;  %415 = vst.msk [vmem:[#allocation5 + $0x8] sm:$0xff] %vm401_vm0, %v1377_v1  ;;  %v420_v14 = vld [vmem:[%s1592_s27 + $0x10] sm:$0xff]  ;;  %v421_v15 = vld [vmem:[%s1592_s27 + $0x18] sm:$0xff]  ;;  %vm1381_vm1 = vmmov 0   ;;  %vm654_vm2 = vcmask 523264  }
  0x5d   : > { %416 = vst.msk [vmem:[#allocation5 + $0x10] sm:$0xff] %vm401_vm0, %v1377_v1  ;;  %417 = vst.msk [vmem:[#allocation5 + $0x18] sm:$0xff] %vm401_vm0, %v1377_v1  ;;  %s1056_s7 = sshll.u32 %s381_s9, 1  ;;  %v430_v3 = vsub.s32 0, %v1616_v2  ;;  %v434_v4 = vsub.s32 1, %v1616_v2  ;;  %v497_v25 = vld [vmem:[%s1599_s13 + $0x10] sm:$0xff]  ;;  %1100 = vmatprep.mubr.msk.f32.mxu0 %vm1381_vm1, %v1378_v59 }
  0x5e   : > { %s386_s18 = scalar_lea.vmem %s1767_s2, %s1056_s7  ;;  %s395_s15 = scalar_lea.vmem %s1768_s3, %s1056_s7  ;;  %v498_v26 = vld [vmem:[%s1599_s13 + $0x18] sm:$0xff]  ;;  %v495_v27 = vld [vmem:[%s1599_s13] sm:$0xff]  ;;  %v496_v32 = vld [vmem:[%s1599_s13 + $0x8] sm:$0xff]  ;;  %403 = vst.msk [vmem:[#allocation2 + $0x8] sm:$0xff] %vm401_vm0, %v1378_v59  ;;  %vm729_vm3 = vcmask 15360   ;;  %vm742_vm4 = vcmask 1041408  }
  0x5f   : > { %v426_v7 = vld [vmem:[%s386_s18] sm:$0x3]  ;;  %v501_v38 = vld [vmem:[%s1599_s13 + $0x30] sm:$0xff]  ;;  %v502_v39 = vld [vmem:[%s1599_s13 + $0x38] sm:$0xff]  ;;  %402 = vst.msk [vmem:[#allocation2] sm:$0xff] %vm401_vm0, %v1378_v59  ;;  %s1383_s18 = smov 127  }
  0x60   : > { %v431_v8 = vrot.slane %v426_v7, %v430_v3  ;;  %v435_v9 = vrot.slane %v426_v7, %v434_v4  ;;  %v503_v20 = vld [vmem:[%s395_s15] sm:$0x3]  ;;  %v500_v42 = vld [vmem:[%s1599_s13 + $0x28] sm:$0xff]  ;;  %404 = vst.msk [vmem:[#allocation2 + $0x10] sm:$0xff] %vm401_vm0, %v1378_v59  ;;  %405 = vst.msk [vmem:[#allocation2 + $0x18] sm:$0xff] %vm401_vm0, %v1378_v59  ;;  %vm875_vm7 = vcmask 261120  }
  0x61   : > { %v508_v30 = vrot.slane %v503_v20, %v430_v3  ;;  %v512_v31 = vrot.slane %v503_v20, %v434_v4  ;;  %v499_v40 = vld [vmem:[%s1599_s13 + $0x20] sm:$0xff]  ;;  %406 = vst.msk [vmem:[#allocation4] sm:$0xff] %vm401_vm0, %v1378_v59  ;;  %407 = vst.msk [vmem:[#allocation4 + $0x8] sm:$0xff] %vm401_vm0, %v1378_v59  ;;  %v473_v60 = vld [vmem:[#allocation3 + $0x10] sm:$0xff]  ;;  %s1065_s0 = sshll.u32 %s1363_s24, 4  ;;  %s376_s17 = scalar_lea.vmem [#allocation11], %s1588_s28 }
  0x62   : > { %v442_v16 = vmul.f32 %v431_v8, %v422_v5  ;;  %v443_v17 = vmul.f32 %v435_v9, %v423_v6  ;;  %v438_v18 = vmul.f32 %v431_v8, %v418_v10  ;;  %v439_v19 = vmul.f32 %v435_v9, %v419_v11  ;;  %408 = vst.msk [vmem:[#allocation4 + $0x10] sm:$0xff] %vm401_vm0, %v1378_v59  ;;  %v471_v61 = vld [vmem:[#allocation3] sm:$0xff]  ;;  %v474_v4 = vld [vmem:[#allocation3 + $0x18] sm:$0xff]  ;;  %v472_v5 = vld [vmem:[#allocation3 + $0x8] sm:$0xff]  ;;  %s910_s15 = sshll.u32 %s376_s17, 4  ;;  %s1716_s14 = scalar_lea.hbm %s1771_s6, %s1065_s0  ;;  %s1718_s15 = int_to_ptr.vmem [resolvable:$true] %s910_s15 }
  0x63   : > { %v444_v21 = vmul.f32 %v431_v8, %v424_v12  ;;  %v445_v22 = vmul.f32 %v435_v9, %v425_v13  ;;  %v440_v23 = vmul.f32 %v431_v8, %v420_v14  ;;  %v441_v24 = vmul.f32 %v435_v9, %v421_v15  ;;  %409 = vst.msk [vmem:[#allocation4 + $0x18] sm:$0xff] %vm401_vm0, %v1378_v59  ;;  %v548_v10 = vld [vmem:[#allocation5 + $0x8] sm:$0xff]  ;;  %v547_v11 = vld [vmem:[#allocation5] sm:$0xff]  ;;  %s898_s19 = scalar_lea.sflag [#allocation8], %s1588_s28  ;;  %s1285_s27 = scalar_lea.vmem %s1718_s15, 16 }
  0x64   : > { %v481_v28 = vmax.f32 %v442_v16, %v443_v17  ;;  %v475_v29 = vmax.f32 %v438_v18, %v439_v19  ;;  %v517_v35 = vmul.f32 %v508_v30, %v497_v25  ;;  %v518_v36 = vmul.f32 %v512_v31, %v498_v26  ;;  %p1286_p3 = scmp.ne.s32.totalorder %s1718_s15, %s1285_s27  ;;  %p1790_p12 = scmp.ne.s32.totalorder %s1781_s10, 0 }
  0x65   : > { %v484_v33 = vmax.f32 %v444_v21, %v445_v22  ;;  %v478_v34 = vmax.f32 %v440_v23, %v441_v24  ;;  %v515_v37 = vmul.f32 %v508_v30, %v495_v27  ;;  %v516_v41 = vmul.f32 %v512_v31, %v496_v32  ;;  %s1384_s24 = smov [#allocation11]  }
  0x66   : > { %482 = vmax.xlane.f32.xlu1 %v481_v28  ;;  %476 = vmax.xlane.f32.xlu0 %v475_v29  ;;  %v521_v43 = vmul.f32 %v508_v30, %v501_v38  ;;  %v522_v44 = vmul.f32 %v512_v31, %v502_v39  ;;  %v519_v45 = vmul.f32 %v508_v30, %v499_v40  ;;  %v1379_v14 = vmov 0.0|0.0   ;;  %v446_v25 = vld [vmem:[#allocation2] sm:$0xff]  ;;  %p1287_p13 = pnand %p1286_p3, %p1790_p12  ;;  %s1289_s29 = sshll.u32 %s1384_s24, 4  ;;  %s1290_s29 = int_to_ptr.vmem [resolvable:$false] %s1289_s29 }
  0x67   : > { %v554_v46 = vmax.f32 %v517_v35, %v518_v36  ;;  %v551_v47 = vmax.f32 %v515_v37, %v516_v41  ;;  %v520_v48 = vmul.f32 %v512_v31, %v500_v42  ;;  %v453_v51 = vadd.f32 %v441_v24, %v440_v23  ;;  %1111 = vmatprep.subr.bf16.mxu0 %v1379_v14  ;;  %v447_v24 = vld [vmem:[#allocation2 + $0x8] sm:$0xff]  ;;  %v448_v38 = vld [vmem:[#allocation2 + $0x10] sm:$0xff]  ;;  %s1291_s13 = scalar_lea.vmem %s1290_s29, 32  ;;  %p1292_p10 = scmp.lt.s32.totalorder %s1718_s15, %s1290_s29 }
  0x68   : > { %v560_v49 = vmax.f32 %v521_v43, %v522_v44  ;;  %v450_v52 = vadd.f32 %v439_v19, %v438_v18  ;;  %v459_v53 = vadd.f32 %v445_v22, %v444_v21  ;;  %v456_v54 = vadd.f32 %v443_v17, %v442_v16  ;;  %v550_v17 = vld [vmem:[#allocation5 + $0x18] sm:$0xff]  ;;  %v549_v18 = vld [vmem:[#allocation5 + $0x10] sm:$0xff]  ;;  %p1288_p7 = pneg %p1287_p13  ;;  %p1293_p9 = scmp.lt.s32.totalorder %s1291_s13, %s1285_s27 }
  0x69   : > { %v557_v50 = vmax.f32 %v519_v45, %v520_v48  ;;  %v530_v55 = vadd.f32 %v518_v36, %v517_v35  ;;  %v527_v56 = vadd.f32 %v516_v41, %v515_v37  ;;  %v536_v57 = vadd.f32 %v522_v44, %v521_v43  ;;  %v449_v35 = vld [vmem:[#allocation2 + $0x18] sm:$0xff]  ;;  %v524_v44 = vld [vmem:[#allocation4 + $0x8] sm:$0xff] }
  0x6a   : > { %485 = vmax.xlane.f32.xlu1 %v484_v33  ;;  %479 = vmax.xlane.f32.xlu0 %v478_v34  ;;  %v533_v58 = vadd.f32 %v520_v48, %v519_v45  ;;  %vm895_vm10 = vcmask 253952   ;;  %p1294_p11 = por %p1293_p9, %p1292_p10 }
  0x6c   : > { %p1295_p1 = pnand %p1294_p11, %p1288_p7 }
  0x6e   : > { %555 = vmax.xlane.f32.xlu1 %v554_v46  ;;  %552 = vmax.xlane.f32.xlu0 %v551_v47  ;;  %v523_v47 = vld [vmem:[#allocation4] sm:$0xff] }
  0x72   : > { %561 = vmax.xlane.f32.xlu1 %v560_v49  ;;  %558 = vmax.xlane.f32.xlu0 %v557_v50 }
  0x76   : > { %454 = vadd.xlane.f32.xlu1 %v453_v51  ;;  %451 = vadd.xlane.f32.xlu0 %v450_v52 }
  0x7a   : > { %460 = vadd.xlane.f32.xlu1 %v459_v53  ;;  %457 = vadd.xlane.f32.xlu0 %v456_v54  ;;  %v526_v53 = vld [vmem:[#allocation4 + $0x18] sm:$0xff]  ;;  %v525_v54 = vld [vmem:[#allocation4 + $0x10] sm:$0xff] }
  0x7e   : > { %531 = vadd.xlane.f32.xlu1 %v530_v55  ;;  %528 = vadd.xlane.f32.xlu0 %v527_v56 }
  0x82   : > { %537 = vadd.xlane.f32.xlu1 %v536_v57  ;;  %534 = vadd.xlane.f32.xlu0 %v533_v58 }
  0xf3   : > { %v483_v62 = vpop.xlane.xlu1 %482  ;;  %v477_v63 = vpop.xlane.xlu0 %476 }
  0xf4   : > { %v489_v1 = vmax.f32 %v473_v60, %v483_v62  ;;  %v487_v3 = vmax.f32 %v471_v61, %v477_v63 }
  0xf6   : > { %493 = vst.msk [vmem:[#allocation3 + $0x10] sm:$0xff] %vm401_vm0, %v489_v1  ;;  %491 = vst.msk [vmem:[#allocation3] sm:$0xff] %vm401_vm0, %v487_v3 }
  0xf7   : > { %v486_v6 = vpop.xlane.xlu1 %485  ;;  %v480_v7 = vpop.xlane.xlu0 %479 }
  0xf8   : > { %v490_v8 = vmax.f32 %v474_v4, %v486_v6  ;;  %v488_v9 = vmax.f32 %v472_v5, %v480_v7 }
  0xfa   : > { %494 = vst.msk [vmem:[#allocation3 + $0x18] sm:$0xff] %vm401_vm0, %v490_v8  ;;  %492 = vst.msk [vmem:[#allocation3 + $0x8] sm:$0xff] %vm401_vm0, %v488_v9 }
  0xfb   : > { %v556_v12 = vpop.xlane.xlu1 %555  ;;  %v553_v13 = vpop.xlane.xlu0 %552 }
  0xfc   : > { %v564_v15 = vmax.f32 %v548_v10, %v556_v12  ;;  %v563_v16 = vmax.f32 %v547_v11, %v553_v13 }
  0xfd   : > { %v608_v21 = vld [vmem:[#allocation3 + $0x10] sm:$0xff]  ;;  %v606_v27 = vld [vmem:[#allocation3] sm:$0xff] }
  0xfe   : > { %568 = vst.msk [vmem:[#allocation5 + $0x8] sm:$0xff] %vm401_vm0, %v564_v15  ;;  %567 = vst.msk [vmem:[#allocation5] sm:$0xff] %vm401_vm0, %v563_v16 }
  0xff   : > { %v562_v19 = vpop.xlane.xlu1 %561  ;;  %v559_v20 = vpop.xlane.xlu0 %558 }
 0x100   : > { %v566_v22 = vmax.f32 %v550_v17, %v562_v19  ;;  %v565_v23 = vmax.f32 %v549_v18, %v559_v20 }
 0x101   : > { %v609_v26 = vld [vmem:[#allocation3 + $0x18] sm:$0xff]  ;;  %v607_v28 = vld [vmem:[#allocation3 + $0x8] sm:$0xff] }
 0x102   : > { %570 = vst.msk [vmem:[#allocation5 + $0x18] sm:$0xff] %vm401_vm0, %v566_v22  ;;  %569 = vst.msk [vmem:[#allocation5 + $0x10] sm:$0xff] %vm401_vm0, %v565_v23  ;;  %v1204_v29 = vpack.i.bf16 %v609_v26, %v608_v21  ;;  %v1199_v30 = vpack.i.bf16 %v607_v28, %v606_v27 }
 0x103   : > { %v455_v31 = vpop.xlane.xlu1 %454  ;;  %v452_v32 = vpop.xlane.xlu0 %451 }
 0x104   : > { %1205 = vrot.lane.b32.xlu1 %v1204_v29, %s1380_s30  ;;  %1200 = vrot.lane.b32.xlu0 %v1199_v30, %s1380_s30  ;;  %v463_v33 = vadd.f32 %v455_v31, %v447_v24  ;;  %v462_v34 = vadd.f32 %v452_v32, %v446_v25 }
 0x105   : > { %v610_v36 = vld [vmem:[#allocation5] sm:$0xff]  ;;  %v611_v37 = vld [vmem:[#allocation5 + $0x8] sm:$0xff] }
 0x106   : > { %v1209_v39 = vpack.i.bf16 %v611_v37, %v610_v36  ;;  %468 = vst.msk [vmem:[#allocation2 + $0x8] sm:$0xff] %vm401_vm0, %v463_v33  ;;  %467 = vst.msk [vmem:[#allocation2] sm:$0xff] %vm401_vm0, %v462_v34 }
 0x107   : > { %v461_v40 = vpop.xlane.xlu1 %460  ;;  %v458_v41 = vpop.xlane.xlu0 %457 }
 0x108   : > { %1210 = vrot.lane.b32.xlu1 %v1209_v39, %s1380_s30  ;;  %v465_v42 = vadd.f32 %v461_v40, %v449_v35  ;;  %v464_v43 = vadd.f32 %v458_v41, %v448_v38  ;;  %v585_v38 = vld [vmem:[%s1769_s4] sm:$0x3] }
 0x109   : > { %v612_v45 = vld [vmem:[#allocation5 + $0x10] sm:$0xff]  ;;  %v613_v46 = vld [vmem:[#allocation5 + $0x18] sm:$0xff]  ;;  %v586_v39 = vld [vmem:[%s1770_s5] sm:$0xff] }
 0x10a   : > { %v1214_v48 = vpack.i.bf16 %v613_v46, %v612_v45  ;;  %470 = vst.msk [vmem:[#allocation2 + $0x18] sm:$0xff] %vm401_vm0, %v465_v42  ;;  %469 = vst.msk [vmem:[#allocation2 + $0x10] sm:$0xff] %vm401_vm0, %v464_v43  ;;  %1105 = vmatprep.mubr.msk.f32.mxu1 %vm729_vm3, %v586_v39  ;;  %v588_v43 = vld [vmem:[%s1770_s5 + $0x10] sm:$0xff]  ;;  %v1382_v45 = vmov 0  }
 0x10b   : > { %v532_v49 = vpop.xlane.xlu1 %531  ;;  %v529_v50 = vpop.xlane.xlu0 %528  ;;  %1219 = vset.pattern.permute.xlu1 %v1382_v45  ;;  %1220 = vset.pattern.permute.xlu0 %v1382_v45 }
 0x10c   : > { %1215 = vrot.lane.b32.xlu1 %v1214_v48, %s1380_s30  ;;  %v540_v51 = vadd.f32 %v532_v49, %v524_v44  ;;  %v539_v52 = vadd.f32 %v529_v50, %v523_v47  ;;  %v589_v44 = vld [vmem:[%s1770_s5 + $0x18] sm:$0xff] }
 0x10d   : > { %v590_v59 = vld [vmem:[#allocation2] sm:$0xff]  ;;  %v591_v60 = vld [vmem:[#allocation2 + $0x8] sm:$0xff] }
 0x10e   : > { %544 = vst.msk [vmem:[#allocation4 + $0x8] sm:$0xff] %vm401_vm0, %v540_v51  ;;  %543 = vst.msk [vmem:[#allocation4] sm:$0xff] %vm401_vm0, %v539_v52  ;;  %v598_v1 = vmul.f32 0.00390625, %v590_v59  ;;  %v599_v3 = vmul.f32 0.00390625, %v591_v60  ;;  %v580_v59 = vand.u32 127, %v428_v0  ;;  %v577_v60 = vadd.s32 16, %v1616_v2 }
 0x10f   : > { %v538_v55 = vpop.xlane.xlu1 %537  ;;  %v535_v56 = vpop.xlane.xlu0 %534 }
 0x110   : > { %v542_v57 = vadd.f32 %v538_v55, %v526_v53  ;;  %v541_v58 = vadd.f32 %v535_v56, %v525_v54  ;;  %vm581_vm6 = vcmp.eq.s32.totalorder %v1616_v2, %v580_v59  ;;  %vm583_vm8 = vcmp.eq.s32.totalorder %v577_v60, %v580_v59 }
 0x111   : > { %v593_v61 = vld [vmem:[#allocation2 + $0x18] sm:$0xff]  ;;  %v592_v4 = vld [vmem:[#allocation2 + $0x10] sm:$0xff] }
 0x112   : > { %546 = vst.msk [vmem:[#allocation4 + $0x18] sm:$0xff] %vm401_vm0, %v542_v57  ;;  %545 = vst.msk [vmem:[#allocation4 + $0x10] sm:$0xff] %vm401_vm0, %v541_v58  ;;  %v601_v5 = vmul.f32 0.00390625, %v593_v61  ;;  %v600_v13 = vmul.f32 0.00390625, %v592_v4  ;;  %v576_v58 = vadd.s32 8, %v1616_v2  ;;  %v578_v61 = vadd.s32 24, %v1616_v2 }
 0x114   : > { %vm582_vm5 = vcmp.eq.s32.totalorder %v576_v58, %v580_v59  ;;  %vm584_vm9 = vcmp.eq.s32.totalorder %v578_v61, %v580_v59 }
 0x115   : > { %v595_v10 = vld [vmem:[#allocation4 + $0x8] sm:$0xff]  ;;  %v594_v17 = vld [vmem:[#allocation4] sm:$0xff] }
 0x116   : > { %v603_v18 = vmul.f32 0.00390625, %v595_v10  ;;  %v602_v24 = vmul.f32 0.00390625, %v594_v17 }
 0x119   : > { %v597_v23 = vld [vmem:[#allocation4 + $0x18] sm:$0xff]  ;;  %v596_v27 = vld [vmem:[#allocation4 + $0x10] sm:$0xff] }
 0x11a   : > { %v605_v28 = vmul.f32 0.00390625, %v597_v23  ;;  %v604_v33 = vmul.f32 0.00390625, %v596_v27 }
 0x176   : > { %v1206_v62 = vpop.permute.xlu1 %1205  ;;  %v1201_v63 = vpop.permute.xlu0 %1200 }
 0x177   : > { %v1208_v6 = vunpack.i.h.bf16 %v1206_v62  ;;  %v1207_v7 = vunpack.i.l.bf16 %v1206_v62  ;;  %v1203_v8 = vunpack.i.h.bf16 %v1201_v63  ;;  %v1202_v9 = vunpack.i.l.bf16 %v1201_v63 }
 0x179   : > { %v646_v11 = vsel %vm401_vm0, %v598_v1, %v1202_v9  ;;  %v647_v12 = vsel %vm401_vm0, %v599_v3, %v1203_v8  ;;  %v648_v21 = vsel %vm401_vm0, %v600_v13, %v1207_v7  ;;  %v649_v22 = vsel %vm401_vm0, %v601_v5, %v1208_v6 }
 0x17a   : > { %v1211_v15 = vpop.permute.xlu1 %1210  ;;  %v1112_v16 = vpack.c.bf16 %v647_v12, %v646_v11  ;;  %v1115_v26 = vpack.c.bf16 %v649_v22, %v648_v21 }
 0x17b   : > { %v1213_v19 = vunpack.i.h.bf16 %v1211_v15  ;;  %v1212_v20 = vunpack.i.l.bf16 %v1211_v15 }
 0x17c   : > { %1113 = vmatpush3.bf16.msra.mxu0 %v1112_v16 }
 0x17d   : > { %1114 = vmatprep.subr.bf16.mxu0 %v1379_v14  ;;  %v650_v31 = vsel %vm401_vm0, %v602_v24, %v1212_v20  ;;  %v651_v32 = vsel %vm401_vm0, %v603_v18, %v1213_v19 }
 0x17e   : > { %v1216_v25 = vpop.permute.xlu1 %1215  ;;  %v1118_v34 = vpack.c.bf16 %v651_v32, %v650_v31 }
 0x17f   : > { %v1218_v29 = vunpack.i.h.bf16 %v1216_v25  ;;  %v1217_v30 = vunpack.i.l.bf16 %v1216_v25 }
 0x180   : > { %1116 = vmatpush3.bf16.msra.mxu0 %v1115_v26 }
 0x181   : > { %1117 = vmatprep.subr.bf16.mxu0 %v1379_v14  ;;  %v652_v35 = vsel %vm401_vm0, %v604_v33, %v1217_v30  ;;  %v653_v36 = vsel %vm401_vm0, %v605_v28, %v1218_v29 }
 0x182   : > { %v1121_v37 = vpack.c.bf16 %v653_v36, %v652_v35 }
 0x184   : > { %1119 = vmatpush3.bf16.msra.mxu0 %v1118_v34 }
 0x185   : > { %1120 = vmatprep.subr.bf16.mxu0 %v1379_v14  ;;  %v587_v14 = vld [vmem:[%s1770_s5 + $0x8] sm:$0xff] }
 0x188   : > { %1122 = vmatpush3.bf16.msra.mxu0 %v1121_v37 }
 0x18b   : > { %1101 = vmatmul.mubr.msk.f32.vlgmr.msra.gmra.mrb[0].mxu0 %vm654_vm2, %v585_v38 }
 0x25e   : > { %v724_v40 = vpop.f32.mrb[0].mxu0 }
 0x25f   : > { %v728_v41 = vmax.f32 %v724_v40, 0.0  ;;  %v1102_v42 = vpop.f32.mrb[1].mxu0 }
 0x261   : > { %1103 = vmatprep.subr.msk.mxu1 %vm742_vm4, %v728_v41 }
 0x262   : > { %1104 = vmatpush3.msk.msra.mxu1 %vm742_vm4, %v728_v41 }
 0x263   : > { %1106 = vmatmul.mubr.msk.f32.vlgmr.msra.gmra.mrb[0].mxu1 %vm729_vm3, %v587_v14 }
 0x264   : > { %1108 = vmatprep.mubr.msk.f32.mxu1 %vm729_vm3, %v588_v43 }
 0x267   : > { %1109 = vmatmul.mubr.msk.f32.gmra.mrb[2].mxu1 %vm729_vm3, %v589_v44 }
 0x336   : > { %v1107_v46 = vpop.f32.mrb[0].mxu1 }
 0x337   : > { %837 = vrot.lane.b32.xlu1 %v1107_v46, %s1383_s18  ;;  %v812_v47 = vpop.f32.mrb[1].mxu1 }
 0x338   : > { %835 = vrot.lane.b32.xlu0 %v812_v47, %s1383_s18 }
 0x33a   : > { %v1110_v48 = vpop.f32.mrb[2].mxu1 }
 0x33b   : > { %841 = vrot.lane.b32.xlu1 %v1110_v48, %s1383_s18  ;;  %v822_v49 = vpop.f32.mrb[3].mxu1 }
 0x33c   : > { %839 = vrot.lane.b32.xlu0 %v822_v49, %s1383_s18 }
 0x3a9   : > { %v838_v50 = vpop.permute.xlu1 %837 }
 0x3aa   : > { %v848_v51 = vadd.f32 %v1107_v46, %v838_v50  ;;  %v836_v52 = vpop.permute.xlu0 %835 }
 0x3ab   : > { %v847_v53 = vadd.f32 %v836_v52, %v812_v47 }
 0x3ac   : > { %858 = vperm.xlu1 %1219, %v848_v51  }
 0x3ad   : > { %v842_v54 = vpop.permute.xlu1 %841  ;;  %853 = vperm.xlu0 %1220, %v847_v53  }
 0x3ae   : > { %v850_v55 = vadd.f32 %v1110_v48, %v842_v54  ;;  %v840_v56 = vpop.permute.xlu0 %839 }
 0x3af   : > { %v849_v57 = vadd.f32 %v840_v56, %v822_v49 }
 0x3b1   : > { %868 = vperm.xlu0 %1220, %v850_v55   ;;  %863 = vperm.xlu1 %1219, %v849_v57  }
 0x42b   : > { %v859_v62 = vpop.permute.xlu1 %858 }
 0x42c   : > { %v872_v63 = vsel %vm582_vm5, %v859_v62, 0.0  ;;  %v854_v1 = vpop.permute.xlu0 %853 }
 0x42d   : > { %v871_v3 = vsel %vm581_vm6, %v854_v1, 0.0  ;;  %v877_v4 = vsel %vm875_vm7, %v872_v63, 0.0 }
 0x42e   : > { %v876_v5 = vsel %vm875_vm7, %v871_v3, 0.0 }
 0x42f   : > { %v878_v7 = vadd.f32 %v877_v4, %v876_v5 }
 0x430   : > { %v864_v6 = vpop.permute.xlu1 %863  ;;  %v869_v0 = vpop.permute.xlu0 %868 }
 0x431   : > { %v873_v8 = vsel %vm583_vm8, %v864_v6, 0.0  ;;  %v874_v9 = vsel %vm584_vm9, %v869_v0, 0.0 }
 0x432   : > { %v879_v10 = vsel %vm875_vm7, %v873_v8, 0.0  ;;  %v881_v11 = vsel %vm875_vm7, %v874_v9, 0.0 }
 0x433   : > { %v880_v2 = vadd.f32 %v879_v10, %v878_v7 }
 0x435   : > { %v882_v12 = vadd.f32 %v881_v11, %v880_v2 }
 0x437   : > { %v883_v13 = vrot.slane %v882_v12, 4 }
 0x439   : > { %v884_v15 = vadd.f32 %v883_v13, %v882_v12 }
 0x43b   : > { %v885_v16 = vrot.slane %v884_v15, 2 }
 0x43d   : > { %v886_v17 = vadd.f32 %v885_v16, %v884_v15 }
 0x43f   : > { %v887_v18 = vrot.slane %v886_v17, 1 }
 0x441   : > { %v888_v19 = vadd.f32 %v887_v18, %v886_v17 }
 0x443   : > { %v1064_v20 = vmul.f32 -1.442695, %v888_v19 }
 0x445   : > { %1221 = vpow2.f32 %v1064_v20 }
 0x44f   : > { %v1222_v21 = vpop.eup %1221 }
 0x450   : > { %v892_v22 = vadd.f32 1.0, %v1222_v21 }
 0x452   : > { %1223 = vrcp.f32 %v892_v22 }
 0x45c   : > { %v1224_v23 = vpop.eup %1223 }
 0x45d   : > { %896 = vst.msk [vmem:[%s376_s17] sm:$0x1] %vm895_vm10, %v1224_v23 }
 0x45e   : > { %1298 = shalt.err (!%p1295_p1)
}
 0x45f   : > { %s1299_s28 = scalar_lea.hbm %s1716_s14, 16  ;;  %s1303_s8 = scalar_lea.hbm %s1771_s6, 32 }
 0x460   : > { %p1300_p6 = scmp.ne.s32.totalorder %s1716_s14, %s1299_s28  ;;  %p1304_p4 = scmp.lt.u32.totalorder %s1716_s14, %s1771_s6 }
 0x461   : > { %p1305_p8 = scmp.lt.u32.totalorder %s1303_s8, %s1299_s28  ;;  %p1307_p3 = scmp.lt.u32.totalorder %s1299_s28, %s1716_s14 }
 0x462   : > { %p1301_p2 = pnand %p1300_p6, %p1790_p12 }
 0x463   : > { %p1306_p0 = por %p1305_p8, %p1304_p4 }
 0x464   : > { %p1302_p5 = pneg %p1301_p2 }
 0x465   : > { %p1308_p13 = por %p1307_p3, %p1306_p0 }
 0x467   : > { %p1309_p7 = pnand %p1308_p13, %p1302_p5 }
 0x469   : > { %1312 = shalt.err (!%p1309_p7)
}
 0x46a   : > { %1127 = dma.vmem_to_hbm [thread:$0]  (%p1790_p12), %s1718_s15, 16, %s1716_s14, %s898_s19  }
 0x46b PF: > { %s922_s0 = sand.u32 1, %s1351_s21   ;;  %p1791_p10 = scmp.ne.s32.totalorder %s1782_s12, 0 }
 0x46c   : > { %p1792_p9 = scmp.ge.s32.totalorder %s1371_s26, 2  ;;  %s923_s17 = scalar_lea.sflag [#allocation8], %s922_s0 }
 0x46e   : > { %p1137_p11 = pnand %p1792_p9, %p1791_p10 }
 0x470   : > { %1346 = dma.done.wait (!%p1137_p11), %s923_s17, 16  }
 0x471   : > { %1348 = vsyncadd (!%p1137_p11), %s923_s17, 4294967280  ;;  %s25_s26 = sadd.s32 1, %s1371_s26   ;;  %s1793_s10 = sld [smem:[#allocation15_spill]] }
 0x472   : > { %p22_p1 = scmp.ge.s32.totalorder %s25_s26, 4   ;;  %s1794_s21 = smov %s1355_s22 }
 0x473   : > { %s1795_s22 = smov %s1359_s23  ;;  %s1796_s23 = smov %s1476_s11 }
 0x474   : > { %s1797_s24 = smov %s1367_s25  ;;  %24 = sbr.rel (!%p22_p1) target bundleno = 10 (0xa), region = 116 }
 0x477   : > { %s1798_s25 = smov %s1793_s10 }
 0x47b   :  { %927 = vsyncpa [#allocation7], 1 }
 0x47c   :  { %929 = vsyncpa [#allocation7 + $0x1], 1 }
 0x47d   :  { %930 = vsyncpa [#allocation10], 1 }
 0x47e   :  { %932 = vsyncpa [#allocation10 + $0x1], 1 }
 0x47f   :  { %933 = vsyncpa [#allocation8], 1 }
 0x480   :  { %935 = vsyncpa [#allocation8 + $0x1], 1 }

</bundles_post_ra>
